<compile_context>
chip_gen: v7x
topology: tpu7x:2x2x1
jax: 0.10.0
libtpu: 0.0.40
codegen_flags: <defaults>
</compile_context>

<pallas_src>
import numpy as np

import jax
import jax.numpy as jnp
from jax.experimental import pallas as pl
from jax.experimental.pallas import tpu as pltpu


def _enc2dec_passthrough_kernel(static_in, dynamic_in, future_in,
                                static_out, dynamic_out, future_out,
                                keepalive_smem):
    # Outputs are aliased to inputs (input_output_aliases={0:0,1:1,2:2}), so
    # the decoder inputs already live in the very HBM buffers holding the
    # encoder outputs: no HBM traffic, no VMEM staging, no DMA, no vreg copy.
    del static_in, dynamic_in, future_in
    del static_out, dynamic_out, future_out
    # Minimal SMEM scalar write so the lowered Mosaic body is non-empty
    # (kept per review guidance; do not grow this).
    keepalive_smem[0] = jnp.int32(0)


def seq2seq_enc2dec(encoder_output_static: jax.Array,
                    encoder_output_dynamic: jax.Array,
                    future_features: jax.Array):
    """Pallas implementation of Seq2SeqEnc2Dec forward (zero-copy pass-through).

    For true zero-cost pass-through, call via ``seq2seq_enc2dec_donated`` (or
    jit this with donate_argnums=(0, 1, 2)); otherwise XLA inserts one
    protective HBM->HBM copy per tensor to honor the input/output aliasing.
    """
    n, c = encoder_output_static.shape
    n_d, t_ctx, c_d = encoder_output_dynamic.shape
    n_f, t_pred, c_f = future_features.shape
    assert n == n_d == n_f and c == c_d == c_f

    out_shapes = (
        jax.ShapeDtypeStruct((n, c), encoder_output_static.dtype),
        jax.ShapeDtypeStruct((n, t_ctx, c), encoder_output_dynamic.dtype),
        jax.ShapeDtypeStruct((n, t_pred, c), future_features.dtype),
    )

    # memory_space=pl.ANY: leave every operand in place (no auto HBM<->VMEM
    # pipeline, no (8,128) tiling constraints, no VMEM footprint at all).
    any_spec = pl.BlockSpec(memory_space=pl.ANY)

    return pl.pallas_call(
        _enc2dec_passthrough_kernel,
        out_shape=out_shapes,
        in_specs=[any_spec, any_spec, any_spec],
        out_specs=(any_spec, any_spec, any_spec),
        scratch_shapes=[pltpu.SMEM((1,), jnp.int32)],
        # Each output aliases the corresponding input buffer: pass-through
        # with no data movement inside the kernel.
        input_output_aliases={0: 0, 1: 1, 2: 2},
        # Advertise the true (zero) cost so XLA does not schedule around an
        # apparently heavy opaque custom call.
        cost_estimate=pl.CostEstimate(flops=0, transcendentals=0,
                                      bytes_accessed=0),
    )(encoder_output_static, encoder_output_dynamic, future_features)


# Donating entry point: with donated inputs the input/output aliasing is
# realized with zero data movement on v5e / v6e / v7x (no defensive copies).
seq2seq_enc2dec_donated = jax.jit(seq2seq_enc2dec, donate_argnums=(0, 1, 2))


if __name__ == "__main__":
    key = jax.random.PRNGKey(0)
    k1, k2, k3 = jax.random.split(key, 3)

    batch = 2
    num_features = 32
    context_length = 8
    prediction_length = 8

    encoder_output_static = jax.random.normal(
        k1, (batch, num_features), dtype=jnp.float32)
    encoder_output_dynamic = jax.random.normal(
        k2, (batch, context_length, num_features), dtype=jnp.float32)
    future_features = jax.random.normal(
        k3, (batch, prediction_length, num_features), dtype=jnp.float32)

    # ---- Path 1: non-donated call (inputs remain valid afterwards). -------
    out_static, out_dynamic, out_future = seq2seq_enc2dec(
        encoder_output_static, encoder_output_dynamic, future_features)
    jax.block_until_ready((out_static, out_dynamic, out_future))

    assert out_static.shape == (batch, num_features)
    assert out_dynamic.shape == (batch, context_length, num_features)
    assert out_future.shape == (batch, prediction_length, num_features)
    assert out_static.dtype == encoder_output_static.dtype
    assert jnp.array_equal(out_static, encoder_output_static)
    assert jnp.array_equal(out_dynamic, encoder_output_dynamic)
    assert jnp.array_equal(out_future, future_features)

    # ---- Path 2: donated call (zero-copy). Snapshot inputs to host FIRST; -
    # the device buffers are invalid after donation.
    static_np = np.asarray(encoder_output_static)
    dynamic_np = np.asarray(encoder_output_dynamic)
    future_np = np.asarray(future_features)

    d_static, d_dynamic, d_future = seq2seq_enc2dec_donated(
        encoder_output_static, encoder_output_dynamic, future_features)
    jax.block_until_ready((d_static, d_dynamic, d_future))

    assert d_static.shape == (batch, num_features)
    assert d_dynamic.shape == (batch, context_length, num_features)
    assert d_future.shape == (batch, prediction_length, num_features)
    assert np.array_equal(np.asarray(d_static), static_np)
    assert np.array_equal(np.asarray(d_dynamic), dynamic_np)
    assert np.array_equal(np.asarray(d_future), future_np)

    print("KERNEL_OK")
</pallas_src>

<mosaic_0001>
module attributes {stable_mosaic.version = 11 : i64} {
  func.func @_enc2dec_passthrough_kernel(%arg0: memref<2x32xf32, #tpu.memory_space<any>>, %arg1: memref<2x8x32xf32, #tpu.memory_space<any>>, %arg2: memref<2x8x32xf32, #tpu.memory_space<any>>, %arg3: memref<2x32xf32, #tpu.memory_space<any>>, %arg4: memref<2x8x32xf32, #tpu.memory_space<any>>, %arg5: memref<2x8x32xf32, #tpu.memory_space<any>>, %arg6: memref<1xi32, #tpu.memory_space<smem>>) attributes {dimension_semantics = [], scalar_prefetch = 0 : i64, scratch_operands = 1 : i64, tpu.core_type = #tpu.core_type<tc>} {
    %c0_i32 = arith.constant 0 : i32
    %c0 = arith.constant 0 : index
    %0 = memref.load %arg6[%c0] : memref<1xi32, #tpu.memory_space<smem>>
    memref.store %c0_i32, %arg6[%c0] : memref<1xi32, #tpu.memory_space<smem>>
    return
  }
}

</mosaic_0001>

<bundles_post_ra>
// kernel: tpu_custom_call.1
= control target key start
LH: loop header
LB: loop body
LE: loop exit
PB: predicated region body
PF: predicated region fallthrough
CT: control target
= control target key end

     0   :  { %s43_s0 = inlined_call_operand.hbm [shape: f32[2,32], index: 0, kind: input, shape index: {}, may-alias: {0,3}]   ;;  %s44_s1 = inlined_call_operand.hbm [shape: f32[2,8,32], index: 1, kind: input, shape index: {}, may-alias: {1,4}]   ;;  %s45_s2 = inlined_call_operand.hbm [shape: f32[2,8,32], index: 2, kind: input, shape index: {}, may-alias: {2,5}]   ;;  %s46_s3 = inlined_call_operand.hbm [shape: f32[2,32], index: 3, kind: output, shape index: {0}, may-alias: {0,3}]   ;;  %s47_s4 = inlined_call_operand.hbm [shape: f32[2,8,32], index: 4, kind: output, shape index: {1}, may-alias: {1,4}]   ;;  %s48_s5 = inlined_call_operand.hbm [shape: f32[2,8,32], index: 5, kind: output, shape index: {2}, may-alias: {2,5}]  }

</bundles_post_ra>
